<compile_context>
chip_gen: v6e
topology: v6e:2x2x1
jax: 0.10.0
libtpu: 0.0.40
codegen_flags: <defaults>
</compile_context>

<pallas_src>
import functools

import jax
import jax.numpy as jnp
from jax import lax
from jax.experimental import pallas as pl
from jax.experimental.pallas import tpu as pltpu

RAW_KEEP = 6
YEAR_V, YEAR_D = 3, 1
MONTH_V, MONTH_D = 13, 5
DAY_V, DAY_D = 31, 10
HOUR_V, HOUR_D = 24, 10

EMB_F = YEAR_D + MONTH_D + DAY_D + HOUR_D          # 26
OUT_F = RAW_KEEP + EMB_F                           # 32

# Lane offsets of each vocabulary inside the fused (128, 26) table.
Y_OFF = 0
M_OFF = Y_OFF + YEAR_V                             # 3
D_OFF = M_OFF + MONTH_V                            # 16
H_OFF = D_OFF + DAY_V                              # 47
VOCAB_PAD = 128                                    # total vocab 71, pad to one vreg lane width


def _round_up(x, m):
    return ((x + m - 1) // m) * m


def build_fused_table(params):
    """Stack the 4 embedding tables into one (128, 26) block table."""
    t = jnp.zeros((VOCAB_PAD, EMB_F), jnp.float32)
    c0 = 0
    t = t.at[Y_OFF:Y_OFF + YEAR_V, c0:c0 + YEAR_D].set(params["year"]);   c0 += YEAR_D
    t = t.at[M_OFF:M_OFF + MONTH_V, c0:c0 + MONTH_D].set(params["month"]); c0 += MONTH_D
    t = t.at[D_OFF:D_OFF + DAY_V, c0:c0 + DAY_D].set(params["day"]);       c0 += DAY_D
    t = t.at[H_OFF:H_OFF + HOUR_V, c0:c0 + HOUR_D].set(params["hour"])
    return t


def date_embed_kernel(x_ref, tab_ref, o_ref):
    x = x_ref[...]                                   # (TILE_N, F) float32
    tile_n, f = x.shape

    # Last 4 features -> integer date codes (matches PyTorch .long()).
    idx = x[:, f - 4:f].astype(jnp.int32)            # (TILE_N, 4)

    # One lane iota + 4 offset-shifted compares -> multi-hot row over 128 lanes.
    lane = lax.broadcasted_iota(jnp.int32, (tile_n, VOCAB_PAD), 1)
    hot = ((lane == idx[:, 0:1] + Y_OFF) |
           (lane == idx[:, 1:2] + M_OFF) |
           (lane == idx[:, 2:3] + D_OFF) |
           (lane == idx[:, 3:4] + H_OFF))

    # Single fused gather: (TILE_N, 128) @ (128, 26) on the MXU.
    emb = jnp.dot(hot.astype(jnp.float32), tab_ref[...],
                  preferred_element_type=jnp.float32)   # (TILE_N, 26)

    # Store each piece directly into its output lane window (no concat).
    o_ref[:, 0:RAW_KEEP] = x[:, 0:RAW_KEEP]
    o_ref[:, RAW_KEEP:OUT_F] = emb


def weather_date_embedded(data, params, tile_n=2048):
    """data: (B, S, F) float32 with F >= 10. Returns (B, S, 32) float32."""
    B, S, F = data.shape
    N = B * S
    x2d = data.reshape(N, F)

    # Row tile: multiple of 8, sized well under scoped VMEM on all generations
    # (2048 rows -> ~1 MiB per double-buffered VMEM buffer; safe on v7x's 64 MiB).
    tile_n = max(8, min(tile_n, _round_up(N, 8)))
    n_blocks = pl.cdiv(N, tile_n)
    n_pad = n_blocks * tile_n
    if n_pad != N:
        # Zero padding is safe: index 0 is in-range for every vocabulary.
        x2d = jnp.pad(x2d, ((0, n_pad - N), (0, 0)))

    fused_table = build_fused_table(params)          # (128, 26)

    out2d = pl.pallas_call(
        date_embed_kernel,
        out_shape=jax.ShapeDtypeStruct((n_pad, OUT_F), jnp.float32),
        grid_spec=pltpu.PrefetchScalarGridSpec(
            num_scalar_prefetch=0,
            grid=(n_blocks,),
            in_specs=[
                pl.BlockSpec((tile_n, F), lambda i: (i, 0)),
                # Constant block index -> table stays resident, no per-step DMA.
                pl.BlockSpec((VOCAB_PAD, EMB_F), lambda i: (0, 0)),
            ],
            out_specs=pl.BlockSpec((tile_n, OUT_F), lambda i: (i, 0)),
        ),
        compiler_params=pltpu.CompilerParams(
            dimension_semantics=("parallel",)),      # shard rows across v7x's 2 TCs
    )(x2d, fused_table)

    return out2d[:N].reshape(B, S, OUT_F)


def init_params(key):
    """Deterministic stand-in for nn.Embedding weights (N(0,1) init)."""
    k1, k2, k3, k4 = jax.random.split(key, 4)
    return {
        "year": jax.random.normal(k1, (YEAR_V, YEAR_D), jnp.float32),
        "month": jax.random.normal(k2, (MONTH_V, MONTH_D), jnp.float32),
        "day": jax.random.normal(k3, (DAY_V, DAY_D), jnp.float32),
        "hour": jax.random.normal(k4, (HOUR_V, HOUR_D), jnp.float32),
    }


if __name__ == "__main__":
    key = jax.random.PRNGKey(0)
    kp, kraw, ky, km, kd, kh = jax.random.split(key, 6)

    params = init_params(kp)

    # Small example: batch=2, seq=8, features=10 (6 raw + 4 date codes).
    B, S, F = 2, 8, 10
    raw_feats = jax.random.normal(kraw, (B, S, RAW_KEEP), jnp.float32)
    year = jax.random.randint(ky, (B, S, 1), 0, YEAR_V).astype(jnp.float32)
    month = jax.random.randint(km, (B, S, 1), 1, MONTH_V).astype(jnp.float32)
    day = jax.random.randint(kd, (B, S, 1), 0, DAY_V).astype(jnp.float32)
    hour = jax.random.randint(kh, (B, S, 1), 0, HOUR_V).astype(jnp.float32)
    data = jnp.concatenate([raw_feats, year, month, day, hour], axis=-1)

    fwd = jax.jit(functools.partial(weather_date_embedded, params=params))
    out = fwd(data)
    jax.block_until_ready(out)

    # Pure-JAX reference check of the embedding-gather + concat semantics.
    idx = data[:, :, -4:].astype(jnp.int32)
    ref = jnp.concatenate(
        [
            data[:, :, 0:RAW_KEEP],
            params["year"][idx[:, :, 0]],
            params["month"][idx[:, :, 1]],
            params["day"][idx[:, :, 2]],
            params["hour"][idx[:, :, 3]],
        ],
        axis=-1,
    )
    assert out.shape == (B, S, OUT_F)
    assert jnp.allclose(out, ref, atol=1e-6), "mismatch vs reference"

    print("KERNEL_OK")
</pallas_src>

<mosaic_0001>
module attributes {stable_mosaic.version = 11 : i64} {
  func.func @date_embed_kernel(%arg0: i32, %arg1: memref<16x10xf32, #tpu.memory_space<vmem>>, %arg2: memref<128x26xf32, #tpu.memory_space<vmem>>, %arg3: memref<16x32xf32, #tpu.memory_space<vmem>>) attributes {dimension_semantics = [#tpu.dimension_semantics<parallel>], iteration_bounds = array<i64: 1>, scalar_prefetch = 0 : i64, scratch_operands = 0 : i64, tpu.core_type = #tpu.core_type<tc>, window_params = [{transform_indices = @transform_0, window_bounds = array<i64: 16, 10>}, {pipeline_mode = #tpu.pipeline_mode<synchronous>, transform_indices = @transform_1, window_bounds = array<i64: 128, 26>}, {transform_indices = @transform_2, window_bounds = array<i64: 16, 32>}]} {
    %c0 = arith.constant 0 : index
    %c0_0 = arith.constant 0 : index
    %0 = vector.load %arg1[%c0, %c0_0] : memref<16x10xf32, #tpu.memory_space<vmem>>, vector<16x10xf32>
    %1 = vector.extract_strided_slice %0 {offsets = [0, 6], sizes = [16, 4], strides = [1, 1]} : vector<16x10xf32> to vector<16x4xf32>
    %2 = arith.fptosi %1 : vector<16x4xf32> to vector<16x4xi32>
    %3 = tpu.iota {dimensions = array<i32: 1>} : vector<16x128xi32>
    %4 = vector.extract_strided_slice %2 {offsets = [0, 0], sizes = [16, 1], strides = [1, 1]} : vector<16x4xi32> to vector<16x1xi32>
    %c0_i32 = arith.constant 0 : i32
    %5 = vector.broadcast %c0_i32 : i32 to vector<16x1xi32>
    %6 = arith.addi %4, %5 : vector<16x1xi32>
    %7 = vector.broadcast %6 : vector<16x1xi32> to vector<16x128xi32>
    %8 = arith.cmpi eq, %3, %7 : vector<16x128xi32>
    %9 = vector.extract_strided_slice %2 {offsets = [0, 1], sizes = [16, 1], strides = [1, 1]} : vector<16x4xi32> to vector<16x1xi32>
    %c3_i32 = arith.constant 3 : i32
    %10 = vector.broadcast %c3_i32 : i32 to vector<16x1xi32>
    %11 = arith.addi %9, %10 : vector<16x1xi32>
    %12 = vector.broadcast %11 : vector<16x1xi32> to vector<16x128xi32>
    %13 = arith.cmpi eq, %3, %12 : vector<16x128xi32>
    %14 = arith.ori %8, %13 : vector<16x128xi1>
    %15 = vector.extract_strided_slice %2 {offsets = [0, 2], sizes = [16, 1], strides = [1, 1]} : vector<16x4xi32> to vector<16x1xi32>
    %c16_i32 = arith.constant 16 : i32
    %16 = vector.broadcast %c16_i32 : i32 to vector<16x1xi32>
    %17 = arith.addi %15, %16 : vector<16x1xi32>
    %18 = vector.broadcast %17 : vector<16x1xi32> to vector<16x128xi32>
    %19 = arith.cmpi eq, %3, %18 : vector<16x128xi32>
    %20 = arith.ori %14, %19 : vector<16x128xi1>
    %21 = vector.extract_strided_slice %2 {offsets = [0, 3], sizes = [16, 1], strides = [1, 1]} : vector<16x4xi32> to vector<16x1xi32>
    %c47_i32 = arith.constant 47 : i32
    %22 = vector.broadcast %c47_i32 : i32 to vector<16x1xi32>
    %23 = arith.addi %21, %22 : vector<16x1xi32>
    %24 = vector.broadcast %23 : vector<16x1xi32> to vector<16x128xi32>
    %25 = arith.cmpi eq, %3, %24 : vector<16x128xi32>
    %26 = arith.ori %20, %25 : vector<16x128xi1>
    %27 = arith.extui %26 : vector<16x128xi1> to vector<16x128xi32>
    %28 = arith.sitofp %27 : vector<16x128xi32> to vector<16x128xf32>
    %c0_1 = arith.constant 0 : index
    %c0_2 = arith.constant 0 : index
    %29 = vector.load %arg2[%c0_1, %c0_2] : memref<128x26xf32, #tpu.memory_space<vmem>>, vector<128x26xf32>
    %cst = arith.constant dense<0.000000e+00> : vector<16x26xf32>
    %30 = tpu.matmul %28, %29, %cst {dimension_numbers = #tpu.dot_dimension_numbers<[1], [0], [0], [1], [0, 0, 1, 1], [], []>} : vector<16x128xf32>, vector<128x26xf32>, vector<16x26xf32> -> vector<16x26xf32>
    %31 = vector.extract_strided_slice %0 {offsets = [0, 0], sizes = [16, 6], strides = [1, 1]} : vector<16x10xf32> to vector<16x6xf32>
    %c0_3 = arith.constant 0 : index
    %c0_4 = arith.constant 0 : index
    %32 = vector.load %arg3[%c0_3, %c0_4] : memref<16x32xf32, #tpu.memory_space<vmem>>, vector<16x6xf32>
    tpu.vector_store %arg3[%c0_3, %c0_4], %31 {strides = array<i32>} : memref<16x32xf32, #tpu.memory_space<vmem>>, vector<16x6xf32>,
    %c0_5 = arith.constant 0 : index
    %c6 = arith.constant 6 : index
    %33 = vector.load %arg3[%c0_5, %c6] : memref<16x32xf32, #tpu.memory_space<vmem>>, vector<16x26xf32>
    tpu.vector_store %arg3[%c0_5, %c6], %30 {strides = array<i32>} : memref<16x32xf32, #tpu.memory_space<vmem>>, vector<16x26xf32>,
    return
  }
  func.func @transform_0(%arg0: i32) -> (i32, i32) {
    %c0_i32 = arith.constant 0 : i32
    %c0_i32_0 = arith.constant 0 : i32
    return %arg0, %c0_i32 : i32, i32
  }
  func.func @transform_1(%arg0: i32) -> (i32, i32) {
    %c0_i32 = arith.constant 0 : i32
    %c0_i32_0 = arith.constant 0 : i32
    %c0_i32_1 = arith.constant 0 : i32
    return %c0_i32, %c0_i32_0 : i32, i32
  }
  func.func @transform_2(%arg0: i32) -> (i32, i32) {
    %c0_i32 = arith.constant 0 : i32
    %c0_i32_0 = arith.constant 0 : i32
    return %arg0, %c0_i32 : i32, i32
  }
}

</mosaic_0001>

<bundles_post_ra>
// kernel: weather_date_embedded.1
= control target key start
LH: loop header
LB: loop body
LE: loop exit
PB: predicated region body
PF: predicated region fallthrough
CT: control target
= control target key end

     0   :  { %7 = vsyncpa [#allocation3], 0  ;;  %s415_s0 = inlined_call_operand.hbm [shape: f32[16,10], index: 0, kind: input, shape index: {}]   ;;  %s416_s1 = inlined_call_operand.hbm [shape: f32[128,26], index: 1, kind: input, shape index: {}]   ;;  %s417_s2 = inlined_call_operand.hbm [shape: f32[16,32], index: 2, kind: output, shape index: {}]  }
   0x1   :  { %8 = vsyncpa [#allocation6], 0 }
   0x2   :  { %9 = vsyncpa [#allocation4], 0  ;;  %s363_s9 = smov [#allocation2]  }
   0x3   :  { %s15_s10 = sshll.u32 %s363_s9, 4  ;;  %s16_s10 = int_to_ptr.vmem [resolvable:$true] %s15_s10 }
   0x4   :  { %s305_s11 = scalar_lea.vmem %s16_s10, 256  ;;  %p310_p1 = scmp.lt.s32.totalorder %s16_s10, %s16_s10 }
   0x5   :  { %p306_p0 = scmp.ne.s32.totalorder %s16_s10, %s305_s11  ;;  %p311_p2 = scmp.lt.s32.totalorder %s305_s11, %s305_s11 }
   0x7   :  { %p312_p3 = por %p311_p2, %p310_p1 }
   0x9   :  { %p313_p4 = pnand %p312_p3, %p306_p0 }
   0xb   :  { %316 = shalt.err (!%p313_p4)
}
   0xc   :  { %s364_s12 = smov 128   ;;  %s365_s13 = smov 8  }
   0xd   :  { %21 = dma.hbm_to_vmem [thread:$0]  %s415_s0, 256, %s16_s10, [#allocation3], %s364_s12, %s364_s12, %s365_s13  }
   0xe   :  { %s366_s16 = smov [#allocation5]  }
   0xf   :  { %s27_s17 = sshll.u32 %s366_s16, 4  ;;  %s28_s17 = int_to_ptr.vmem [resolvable:$true] %s27_s17 }
  0x10   :  { %s325_s18 = scalar_lea.vmem %s28_s17, 2048  ;;  %p330_p6 = scmp.lt.s32.totalorder %s28_s17, %s28_s17 }
  0x11   :  { %p326_p5 = scmp.ne.s32.totalorder %s28_s17, %s325_s18  ;;  %p331_p7 = scmp.lt.s32.totalorder %s325_s18, %s325_s18 }
  0x13   :  { %p332_p8 = por %p331_p7, %p330_p6 }
  0x15   :  { %p333_p9 = pnand %p332_p8, %p326_p5 }
  0x17   :  { %336 = shalt.err (!%p333_p9)
}
  0x18   :  { %33 = dma.hbm_to_vmem [thread:$0]  %s416_s1, 2048, %s28_s17, [#allocation6], %s364_s12, %s364_s12, %s365_s13  }
  0x19   :  { %357 = dma.done.wait [#allocation3], 256  }
  0x1a   :  { %358 = vsyncadd [#allocation3], 4294967040 }
  0x1b   :  { %359 = dma.done.wait [#allocation6], 2048  }
  0x1c   :  { %360 = vsyncadd [#allocation6], 4294965248  ;;  %v367_v0 = vmov 6   ;;  %v401_v1 = vld [vmem:[#allocation2 + $0x8] sm:$0xff]  ;;  %v403_v2 = vld [vmem:[#allocation2] sm:$0xff]  ;;  %v368_v13 = vmov 7   ;;  %v44_v34 = vlaneseq }
  0x1d   :  { %290 = vset.pattern.permute.xlu1 %v367_v0  ;;  %289 = vset.pattern.permute.xlu0 %v367_v0  ;;  %v109_v3 = vld [vmem:[#allocation5 + $0x78] sm:$0xff]  ;;  %v276_v4 = vtrunc.f32 %v401_v1  ;;  %v274_v5 = vtrunc.f32 %v403_v2  ;;  %v108_v6 = vld [vmem:[#allocation5 + $0x70] sm:$0xff]  ;;  %v107_v9 = vld [vmem:[#allocation5 + $0x68] sm:$0xff]  ;;  %v369_v18 = vmov 8   ;;  %v370_v22 = vmov 9   ;;  %s372_s0 = smov 6  }
  0x1e   :  { %239 = vmatprep.subr.mxu0 %v109_v3  ;;  %v106_v10 = vld [vmem:[#allocation5 + $0x60] sm:$0xff]  ;;  %v105_v14 = vld [vmem:[#allocation5 + $0x58] sm:$0xff]  ;;  %v104_v17 = vld [vmem:[#allocation5 + $0x50] sm:$0xff]  ;;  %v45_v36 = vand.u32 127, %v44_v34  ;;  %v371_v41 = vmov 1.0   ;;  %vm185_vm14 = vcmask 48128  }
  0x1f   :  { %240 = vmatpush3.msra.mxu0 %v109_v3  ;;  %v277_v7 = vcvt.f32.s32 %v276_v4  ;;  %v275_v8 = vcvt.f32.s32 %v274_v5  ;;  %v103_v19 = vld [vmem:[#allocation5 + $0x48] sm:$0xff]  ;;  %v102_v21 = vld [vmem:[#allocation5 + $0x40] sm:$0xff]  ;;  %v101_v23 = vld [vmem:[#allocation5 + $0x38] sm:$0xff]  ;;  %186 = vst.msk [vmem:[#allocation7] sm:$0xff] %vm185_vm14, %v403_v2  ;;  %vm196_vm15 = vcmask 261168   ;;  %s373_s1 = smov [#allocation7]  }
  0x20   :  { %241 = vmatprep.subr.mxu0 %v108_v6  ;;  %v100_v25 = vld [vmem:[#allocation5 + $0x30] sm:$0xff]  ;;  %v99_v26 = vld [vmem:[#allocation5 + $0x28] sm:$0xff]  ;;  %v98_v27 = vld [vmem:[#allocation5 + $0x20] sm:$0xff]  ;;  %187 = vst.msk [vmem:[#allocation7 + $0x8] sm:$0xff] %vm185_vm14, %v401_v1  ;;  %s204_s21 = sshll.u32 %s373_s1, 4  ;;  %s205_s21 = int_to_ptr.vmem [resolvable:$true] %s204_s21 }
  0x21   :  { %242 = vmatpush3.msra.mxu0 %v108_v6  ;;  %50 = vperm.xlu1 %290, %v277_v7   ;;  %v55_v11 = vadd.s32 3, %v277_v7  ;;  %v54_v12 = vadd.s32 3, %v275_v8  ;;  %v66_v15 = vadd.s32 16, %v275_v8  ;;  %v67_v16 = vadd.s32 16, %v277_v7  ;;  %v97_v28 = vld [vmem:[#allocation5 + $0x18] sm:$0xff]  ;;  %v96_v29 = vld [vmem:[#allocation5 + $0x10] sm:$0xff]  ;;  %p342_p11 = scmp.lt.s32.totalorder %s205_s21, %s205_s21 }
  0x22   :  { %47 = vperm.xlu0 %289, %v275_v8   ;;  %243 = vmatprep.subr.mxu0 %v107_v9  ;;  %v78_v20 = vadd.s32 47, %v275_v8  ;;  %v79_v24 = vadd.s32 47, %v277_v7  ;;  %v95_v30 = vld [vmem:[#allocation5 + $0x8] sm:$0xff]  ;;  %v94_v31 = vld [vmem:[#allocation5] sm:$0xff]  ;;  %s337_s22 = scalar_lea.vmem %s205_s21, 256 }
  0x23   :  { %244 = vmatpush3.msra.mxu0 %v107_v9  ;;  %p338_p10 = scmp.ne.s32.totalorder %s205_s21, %s337_s22  ;;  %p343_p12 = scmp.lt.s32.totalorder %s337_s22, %s337_s22 }
  0x24   :  { %245 = vmatprep.subr.mxu0 %v106_v10 }
  0x25   :  { %292 = vset.pattern.permute.xlu1 %v368_v13  ;;  %246 = vmatpush3.msra.mxu0 %v106_v10  ;;  %p344_p13 = por %p343_p12, %p342_p11 }
  0x26   :  { %291 = vset.pattern.permute.xlu0 %v368_v13  ;;  %60 = vperm.xlu1 %292, %v55_v11  }
  0x27   :  { %57 = vperm.xlu0 %291, %v54_v12   ;;  %247 = vmatprep.subr.mxu0 %v105_v14  ;;  %p345_p0 = pnand %p344_p13, %p338_p10 }
  0x28   :  { %248 = vmatpush3.msra.mxu0 %v105_v14 }
  0x29   :  { %249 = vmatprep.subr.mxu0 %v104_v17 }
  0x2a   :  { %293 = vset.pattern.permute.xlu1 %v369_v18  ;;  %250 = vmatpush3.msra.mxu0 %v104_v17 }
  0x2b   :  { %294 = vset.pattern.permute.xlu0 %v369_v18  ;;  %69 = vperm.xlu1 %293, %v66_v15  }
  0x2c   :  { %72 = vperm.xlu0 %294, %v67_v16   ;;  %251 = vmatprep.subr.mxu0 %v103_v19 }
  0x2d   :  { %252 = vmatpush3.msra.mxu0 %v103_v19 }
  0x2e   :  { %253 = vmatprep.subr.mxu0 %v102_v21 }
  0x2f   :  { %295 = vset.pattern.permute.xlu1 %v370_v22  ;;  %254 = vmatpush3.msra.mxu0 %v102_v21 }
  0x30   :  { %81 = vperm.xlu1 %295, %v78_v20   ;;  %296 = vset.pattern.permute.xlu0 %v370_v22 }
  0x31   :  { %255 = vmatprep.subr.mxu0 %v101_v23 }
  0x32   :  { %256 = vmatpush3.msra.mxu0 %v101_v23 }
  0x33   :  { %257 = vmatprep.subr.mxu0 %v100_v25 }
  0x34   :  { %84 = vperm.xlu1 %295, %v79_v24   ;;  %258 = vmatpush3.msra.mxu0 %v100_v25 }
  0x35   :  { %259 = vmatprep.subr.mxu0 %v99_v26 }
  0x36   :  { %260 = vmatpush3.msra.mxu0 %v99_v26 }
  0x37   :  { %261 = vmatprep.subr.mxu0 %v98_v27 }
  0x38   :  { %262 = vmatpush3.msra.mxu0 %v98_v27 }
  0x39   :  { %263 = vmatprep.subr.mxu0 %v97_v28 }
  0x3a   :  { %264 = vmatpush3.msra.mxu0 %v97_v28 }
  0x3b   :  { %265 = vmatprep.subr.mxu0 %v96_v29 }
  0x3c   :  { %266 = vmatpush3.msra.mxu0 %v96_v29 }
  0x3d   :  { %267 = vmatprep.subr.mxu0 %v95_v30 }
  0x3e   :  { %268 = vmatpush3.msra.mxu0 %v95_v30 }
  0x3f   :  { %269 = vmatprep.subr.mxu0 %v94_v31 }
  0x40   :  { %270 = vmatpush3.msra.mxu0 %v94_v31 }
  0x9c   :  { %v51_v32 = vpop.permute.xlu1 %50 }
  0x9d   :  { %v48_v33 = vpop.permute.xlu0 %47  ;;  %vm53_vm9 = vcmp.eq.s32.totalorder %v45_v36, %v51_v32 }
  0x9e   :  { %vm52_vm0 = vcmp.eq.s32.totalorder %v45_v36, %v48_v33 }
  0xa1   :  { %v61_v35 = vpop.permute.xlu1 %60 }
  0xa2   :  { %v58_v37 = vpop.permute.xlu0 %57  ;;  %vm63_vm4 = vcmp.eq.s32.totalorder %v45_v36, %v61_v35 }
  0xa3   :  { %vm62_vm1 = vcmp.eq.s32.totalorder %v45_v36, %v58_v37  ;;  %vm65_vm10 = vmor %vm53_vm9, %vm63_vm4 }
  0xa4   :  { %vm64_vm2 = vmor %vm52_vm0, %vm62_vm1 }
  0xa6   :  { %v70_v38 = vpop.permute.xlu1 %69 }
  0xa7   :  { %vm74_vm3 = vcmp.eq.s32.totalorder %v45_v36, %v70_v38  ;;  %v73_v39 = vpop.permute.xlu0 %72 }
  0xa8   :  { %vm76_vm6 = vmor %vm64_vm2, %vm74_vm3  ;;  %vm75_vm7 = vcmp.eq.s32.totalorder %v45_v36, %v73_v39 }
  0xa9   :  { %vm77_vm11 = vmor %vm65_vm10, %vm75_vm7 }
  0xab   :  { %v82_v40 = vpop.permute.xlu1 %81 }
  0xac   :  { %vm86_vm5 = vcmp.eq.s32.totalorder %v45_v36, %v82_v40 }
  0xad   :  { %vm88_vm8 = vmor %vm76_vm6, %vm86_vm5 }
  0xae   :  { %271 = vmatprep.mubr.msk.f32.mxu0 %vm88_vm8, %v371_v41 }
  0xaf   :  { %v85_v42 = vpop.permute.xlu1 %84 }
  0xb0   :  { %vm87_vm12 = vcmp.eq.s32.totalorder %v45_v36, %v85_v42 }
  0xb1   :  { %vm89_vm13 = vmor %vm77_vm11, %vm87_vm12 }
  0xb2   :  { %272 = vmatmul.mubr.msk.f32.vlgmr.msra.gmra.mxu0 %vm89_vm13, %v371_v41 }
 0x172   :  { %v273_v43 = vpop.f32.mrf.mxu0 }
 0x173   :  { %192 = vrot.lane.b32.xlu1 %v273_v43, %s372_s0 }
 0x174   :  { %v176_v44 = vpop.f32.mrf.mxu0 }
 0x175   :  { %190 = vrot.lane.b32.xlu0 %v176_v44, %s372_s0 }
 0x1e5   :  { %v193_v45 = vpop.permute.xlu1 %192 }
 0x1e6   :  { %198 = vst.msk [vmem:[#allocation7 + $0x8] sm:$0xff] %vm196_vm15, %v193_v45 }
 0x1e7   :  { %v191_v46 = vpop.permute.xlu0 %190 }
 0x1e8   :  { %197 = vst.msk [vmem:[#allocation7] sm:$0xff] %vm196_vm15, %v191_v46 }
 0x1e9   :  { %348 = shalt.err (!%p345_p0)
}
 0x1ea   :  { %210 = dma.vmem_to_hbm [thread:$0]  %s205_s21, 256, %s417_s2, [#allocation4], %s364_s12, %s364_s12, %s365_s13  }
 0x1eb   :  { %361 = dma.done.wait [#allocation4], 256  }
 0x1ec   :  { %362 = vsyncadd [#allocation4], 4294967040 }
 0x1ed   :  { %214 = vsyncpa [#allocation3], 1 }
 0x1ee   :  { %215 = vsyncpa [#allocation6], 1 }
 0x1ef   :  { %216 = vsyncpa [#allocation4], 1 }

</bundles_post_ra>
